<compile_context>
chip_gen: v7x
topology: tpu7x:2x2x1
jax: 0.10.0
libtpu: 0.0.40
codegen_flags: <defaults>
</compile_context>

<pallas_src>
import functools
import math

import jax
import jax.numpy as jnp
from jax.experimental import pallas as pl
from jax.experimental.pallas import tpu as pltpu

GAMMA = 2
ALPHA = (0.5, 0.5)
N_CLASS = 2
CLAMP_MIN = 1e-06
CLAMP_MAX = 0.999999
LOG_CLAMP_MIN = math.log(CLAMP_MIN)
LOG_CLAMP_MAX = math.log(CLAMP_MAX)
LANES = 128


def _int_pow(x, gamma):
    """(1 - pt) ** gamma without float pow for small integer gamma (gamma=2 -> square)."""
    g = float(gamma)
    if g.is_integer() and 0 <= int(g) <= 8:
        gi = int(g)
        if gi == 0:
            return jnp.ones_like(x)
        r = x
        for _ in range(gi - 1):
            r = r * x
        return r
    return x ** jnp.float32(g)  # non-integer gamma falls back to exp/log on the EUP


def _focal_loss_kernel(x_ref, t_ref, out_ref, *, gamma, alpha0, alpha1,
                       n_rows, tr, need_row_mask):
    x0 = x_ref[0].astype(jnp.float32)        # (tr, 128) logits, class 0
    x1 = x_ref[1].astype(jnp.float32)        # (tr, 128) logits, class 1
    tgt = t_ref[...]                         # (tr, 128) int32 labels

    is1 = tgt == 1
    x_t = jnp.where(is1, x1, x0)             # target-class logit (single select)
    x_o = (x0 + x1) - x_t                    # other-class logit, no second select

    # Two-class log-softmax via logsumexp: lse = m + log(1 + exp(-|x0 - x1|)).
    m = jnp.maximum(x0, x1)
    z = jnp.exp(-jnp.abs(x0 - x1))                         # EUP exp
    denom = 1.0 + z
    lse_off = jnp.log(denom)                               # EUP log
    log_pt = jnp.clip(x_t - m - lse_off, LOG_CLAMP_MIN, LOG_CLAMP_MAX)

    # For two classes 1 - pt == p_other = exp(x_o - m) / (1 + z); exp(x_o - m)
    # is z when the target logit dominates and 1 otherwise -> no second EUP exp.
    # NOTE: this equals 1 - clamp(pt) only because the clamp bounds are symmetric.
    one_minus_pt = jnp.where(x_t >= x_o, z, 1.0) * pl.reciprocal(denom)
    one_minus_pt = jnp.clip(one_minus_pt, CLAMP_MIN, CLAMP_MAX)

    alpha_t = alpha0 + (alpha1 - alpha0) * is1.astype(jnp.float32)
    loss = -alpha_t * _int_pow(one_minus_pt, gamma) * log_pt       # (tr, 128)

    # Labels outside {0, 1} contribute zero (matches the onehot reference);
    # signed compares kept for lowering robustness.
    valid = (tgt >= 0) & (tgt < 2)
    if need_row_mask:
        # Only emitted when the last tile overhangs n_rows (static decision).
        row = jax.lax.broadcasted_iota(jnp.int32, tgt.shape, 0)
        valid = valid & (row < (n_rows - pl.program_id(1) * tr))
    loss = jnp.where(valid, loss, 0.0)

    # Per-tile (1, 128) partial sum; cross-sublane reduce rides the idle XLU slot.
    out_ref[...] = jnp.sum(loss, axis=0, keepdims=True)


def focal_loss(logits, target, *, gamma=GAMMA, alpha=ALPHA, n_class=N_CLASS,
               reduction="mean", pixels_per_step=262144):
    """logits: (B, C, H, W) float, target: (B, H, W) int -> scalar loss."""
    B, C, H, W = logits.shape
    assert C == n_class == 2, "kernel implements the two-class focal loss"
    HW = H * W
    n_pix = B * HW

    x = logits.reshape(B, C, HW)                   # free reshape of contiguous NCHW
    t = target.reshape(B, HW)
    if t.dtype != jnp.int32:
        # TODO(synk): a native int8 label path would cut HBM traffic ~1.3x.
        t = t.astype(jnp.int32)

    hw_pad = ((HW + LANES - 1) // LANES) * LANES
    if hw_pad != HW:
        # Rare unaligned case: pad pixels once; padded labels = n_class -> masked.
        x = jnp.pad(x, ((0, 0), (0, 0), (0, hw_pad - HW)))
        t = jnp.pad(t, ((0, 0), (0, hw_pad - HW)), constant_values=n_class)
    n_rows = hw_pad // LANES
    x = x.reshape(B, C, n_rows, LANES)
    t = t.reshape(B, n_rows, LANES)

    # Rows per grid step: multiple of 16 sublanes.  Default 2048 rows = 256K px
    # (~3 MiB/step, ~6 MiB double-buffered): amortizes the ~0.35 us/step grid
    # overhead at v7x HBM BW while fitting every generation's scoped-VMEM default.
    desired_rows = max(16, (int(pixels_per_step) // LANES // 16) * 16)
    tr = desired_rows if n_rows > desired_rows else n_rows  # full dim if small
    n_tiles = pl.cdiv(n_rows, tr)
    need_row_mask = (n_rows % tr) != 0

    kernel = functools.partial(
        _focal_loss_kernel, gamma=gamma, alpha0=float(alpha[0]),
        alpha1=float(alpha[1]), n_rows=n_rows, tr=tr, need_row_mask=need_row_mask)

    partials = pl.pallas_call(
        kernel,
        out_shape=jax.ShapeDtypeStruct((B, n_tiles, 1, LANES), jnp.float32),
        grid_spec=pltpu.PrefetchScalarGridSpec(
            num_scalar_prefetch=0,
            grid=(B, n_tiles),
            in_specs=[
                # NOTE: if DMA turns out exposed on v6e, sweep
                # pipeline_mode=pl.Buffered(3) on this logits spec.
                pl.BlockSpec((pl.Squeezed(), C, tr, LANES),
                             lambda b, i: (b, 0, i, 0)),
                pl.BlockSpec((pl.Squeezed(), tr, LANES),
                             lambda b, i: (b, i, 0)),
            ],
            out_specs=pl.BlockSpec((pl.Squeezed(), pl.Squeezed(), 1, LANES),
                                   lambda b, i: (b, i, 0, 0)),
        ),
        compiler_params=pltpu.CompilerParams(
            dimension_semantics=("parallel", "parallel")),
    )(x, t)

    loss_sum = jnp.sum(partials)
    if reduction == "mean":
        return loss_sum / jnp.float32(n_pix)
    if reduction == "sum":
        return loss_sum
    # TODO(synk): reduction='none' needs a per-pixel loss-map output; not implemented here.
    raise NotImplementedError("reduction='none' is not supported by this Pallas kernel")


def _reference(logits, target, gamma=GAMMA, alpha=ALPHA, n_class=N_CLASS):
    pt = jax.nn.softmax(logits.astype(jnp.float32), axis=1)
    pt = jnp.clip(pt, CLAMP_MIN, CLAMP_MAX)
    loss = jnp.zeros(logits.shape[0:1] + logits.shape[2:], jnp.float32)
    for i in range(n_class):
        onehot = (target == i).astype(jnp.float32)
        loss -= alpha[i] * (1.0 - pt[:, i]) ** gamma * onehot * jnp.log(pt[:, i])
    return jnp.mean(loss)


if __name__ == "__main__":
    key = jax.random.PRNGKey(0)
    k1, k2 = jax.random.split(key)
    B, C, H, W = 2, N_CLASS, 16, 16
    logits = jax.random.normal(k1, (B, C, H, W), dtype=jnp.float32)
    target = jax.random.randint(k2, (B, H, W), 0, N_CLASS, dtype=jnp.int32)

    out = focal_loss(logits, target)
    out = jax.block_until_ready(out)

    ref = _reference(logits, target)
    assert jnp.allclose(out, ref, rtol=1e-5, atol=1e-6), (out, ref)
    print("KERNEL_OK")
</pallas_src>

<mosaic_0001>
module attributes {stable_mosaic.version = 11 : i64} {
  func.func @_focal_loss_kernel(%arg0: i32, %arg1: i32, %arg2: memref<1x2x2x128xf32, #tpu.memory_space<vmem>>, %arg3: memref<1x2x128xi32, #tpu.memory_space<vmem>>, %arg4: memref<1x1x1x128xf32, #tpu.memory_space<vmem>>) attributes {dimension_semantics = [#tpu.dimension_semantics<parallel>, #tpu.dimension_semantics<parallel>], iteration_bounds = array<i64: 2, 1>, scalar_prefetch = 0 : i64, scratch_operands = 0 : i64, tpu.core_type = #tpu.core_type<tc>, window_params = [{transform_indices = @transform_0, window_bounds = array<i64: 1, 2, 2, 128>}, {transform_indices = @transform_1, window_bounds = array<i64: 1, 2, 128>}, {transform_indices = @transform_2, window_bounds = array<i64: 1, 1, 1, 128>}]} {
    %c0 = arith.constant 0 : index
    %c0_0 = arith.constant 0 : index
    %c0_1 = arith.constant 0 : index
    %c0_2 = arith.constant 0 : index
    %0 = vector.load %arg2[%c0, %c0_0, %c0_1, %c0_2] : memref<1x2x2x128xf32, #tpu.memory_space<vmem>>, vector<1x1x2x128xf32>
    %1 = vector.shape_cast %0 : vector<1x1x2x128xf32> to vector<2x128xf32>
    %c0_3 = arith.constant 0 : index
    %c1 = arith.constant 1 : index
    %c0_4 = arith.constant 0 : index
    %c0_5 = arith.constant 0 : index
    %2 = vector.load %arg2[%c0_3, %c1, %c0_4, %c0_5] : memref<1x2x2x128xf32, #tpu.memory_space<vmem>>, vector<1x1x2x128xf32>
    %3 = vector.shape_cast %2 : vector<1x1x2x128xf32> to vector<2x128xf32>
    %c0_6 = arith.constant 0 : index
    %c0_7 = arith.constant 0 : index
    %c0_8 = arith.constant 0 : index
    %4 = vector.load %arg3[%c0_6, %c0_7, %c0_8] : memref<1x2x128xi32, #tpu.memory_space<vmem>>, vector<1x2x128xi32>
    %5 = vector.shape_cast %4 : vector<1x2x128xi32> to vector<2x128xi32>
    %c1_i32 = arith.constant 1 : i32
    %6 = vector.broadcast %c1_i32 : i32 to vector<2x128xi32>
    %7 = arith.cmpi eq, %5, %6 : vector<2x128xi32>
    %8 = arith.select %7, %3, %1 : vector<2x128xi1>, vector<2x128xf32>
    %9 = arith.addf %1, %3 : vector<2x128xf32>
    %10 = arith.subf %9, %8 : vector<2x128xf32>
    %11 = arith.maximumf %1, %3 : vector<2x128xf32>
    %12 = arith.subf %1, %3 : vector<2x128xf32>
    %13 = math.absf %12 : vector<2x128xf32>
    %cst = arith.constant 0.000000e+00 : f32
    %14 = vector.broadcast %cst : f32 to vector<2x128xf32>
    %15 = arith.subf %14, %13 : vector<2x128xf32>
    %16 = math.exp %15 : vector<2x128xf32>
    %cst_9 = arith.constant 1.000000e+00 : f32
    %17 = vector.broadcast %cst_9 : f32 to vector<2x128xf32>
    %18 = arith.addf %17, %16 : vector<2x128xf32>
    %19 = math.log %18 : vector<2x128xf32>
    %20 = arith.subf %8, %11 : vector<2x128xf32>
    %21 = arith.subf %20, %19 : vector<2x128xf32>
    %cst_10 = arith.constant -13.8155107 : f32
    %cst_11 = arith.constant -1.00000045E-6 : f32
    %22 = vector.broadcast %cst_10 : f32 to vector<2x128xf32>
    %23 = arith.maximumf %22, %21 : vector<2x128xf32>
    %24 = vector.broadcast %cst_11 : f32 to vector<2x128xf32>
    %25 = arith.minimumf %24, %23 : vector<2x128xf32>
    %26 = arith.cmpf oge, %8, %10 : vector<2x128xf32>
    %cst_12 = arith.constant 1.000000e+00 : f32
    %27 = vector.broadcast %cst_12 : f32 to vector<2x128xf32>
    %28 = arith.select %26, %16, %27 : vector<2x128xi1>, vector<2x128xf32>
    %29 = tpu.reciprocal %18 : vector<2x128xf32> -> vector<2x128xf32>
    %30 = arith.mulf %28, %29 : vector<2x128xf32>
    %cst_13 = arith.constant 9.99999997E-7 : f32
    %cst_14 = arith.constant 0.999998986 : f32
    %31 = vector.broadcast %cst_13 : f32 to vector<2x128xf32>
    %32 = arith.maximumf %31, %30 : vector<2x128xf32>
    %33 = vector.broadcast %cst_14 : f32 to vector<2x128xf32>
    %34 = arith.minimumf %33, %32 : vector<2x128xf32>
    %35 = arith.extui %7 : vector<2x128xi1> to vector<2x128xi32>
    %36 = arith.sitofp %35 : vector<2x128xi32> to vector<2x128xf32>
    %cst_15 = arith.constant 0.000000e+00 : f32
    %37 = vector.broadcast %cst_15 : f32 to vector<2x128xf32>
    %38 = arith.mulf %37, %36 : vector<2x128xf32>
    %cst_16 = arith.constant 5.000000e-01 : f32
    %39 = vector.broadcast %cst_16 : f32 to vector<2x128xf32>
    %40 = arith.addf %39, %38 : vector<2x128xf32>
    %cst_17 = arith.constant 0.000000e+00 : f32
    %41 = vector.broadcast %cst_17 : f32 to vector<2x128xf32>
    %42 = arith.subf %41, %40 : vector<2x128xf32>
    %43 = arith.mulf %34, %34 : vector<2x128xf32>
    %44 = arith.mulf %42, %43 : vector<2x128xf32>
    %45 = arith.mulf %44, %25 : vector<2x128xf32>
    %c0_i32 = arith.constant 0 : i32
    %46 = vector.broadcast %c0_i32 : i32 to vector<2x128xi32>
    %47 = arith.cmpi sge, %5, %46 : vector<2x128xi32>
    %c2_i32 = arith.constant 2 : i32
    %48 = vector.broadcast %c2_i32 : i32 to vector<2x128xi32>
    %49 = arith.cmpi slt, %5, %48 : vector<2x128xi32>
    %50 = arith.andi %47, %49 : vector<2x128xi1>
    %cst_18 = arith.constant 0.000000e+00 : f32
    %51 = vector.broadcast %cst_18 : f32 to vector<2x128xf32>
    %52 = arith.select %50, %45, %51 : vector<2x128xi1>, vector<2x128xf32>
    %cst_19 = arith.constant dense<0.000000e+00> : vector<128xf32>
    %53 = vector.multi_reduction <add>, %52, %cst_19 [0] : vector<2x128xf32> to vector<128xf32>
    %54 = vector.shape_cast %53 : vector<128xf32> to vector<1x128xf32>
    %c0_20 = arith.constant 0 : index
    %c0_21 = arith.constant 0 : index
    %c0_22 = arith.constant 0 : index
    %c0_23 = arith.constant 0 : index
    %55 = vector.load %arg4[%c0_20, %c0_21, %c0_22, %c0_23] : memref<1x1x1x128xf32, #tpu.memory_space<vmem>>, vector<1x1x1x128xf32>
    %56 = vector.shape_cast %55 : vector<1x1x1x128xf32> to vector<1x128xf32>
    %57 = vector.shape_cast %54 : vector<1x128xf32> to vector<1x1x1x128xf32>
    tpu.vector_store %arg4[%c0_20, %c0_21, %c0_22, %c0_23], %57 {strides = array<i32>} : memref<1x1x1x128xf32, #tpu.memory_space<vmem>>, vector<1x1x1x128xf32>,
    return
  }
  func.func @transform_0(%arg0: i32, %arg1: i32) -> (i32, i32, i32, i32) {
    %c0_i32 = arith.constant 0 : i32
    %c0_i32_0 = arith.constant 0 : i32
    %c0_i32_1 = arith.constant 0 : i32
    return %arg0, %c0_i32, %arg1, %c0_i32_0 : i32, i32, i32, i32
  }
  func.func @transform_1(%arg0: i32, %arg1: i32) -> (i32, i32, i32) {
    %c0_i32 = arith.constant 0 : i32
    %c0_i32_0 = arith.constant 0 : i32
    return %arg0, %arg1, %c0_i32 : i32, i32, i32
  }
  func.func @transform_2(%arg0: i32, %arg1: i32) -> (i32, i32, i32, i32) {
    %c0_i32 = arith.constant 0 : i32
    %c0_i32_0 = arith.constant 0 : i32
    %c0_i32_1 = arith.constant 0 : i32
    return %arg0, %arg1, %c0_i32, %c0_i32_0 : i32, i32, i32, i32
  }
}

</mosaic_0001>

<bundles_post_ra>
// kernel: tpu_custom_call.1
= control target key start
LH: loop header
LB: loop body
LE: loop exit
PB: predicated region body
PF: predicated region fallthrough
CT: control target
= control target key end

     0   :  { %7 = vsyncpa [#allocation3], 0  ;;  %s860_s0 = inlined_call_operand.hbm [shape: f32[2,2,2,128], index: 0, kind: input, shape index: {}]   ;;  %s861_s1 = inlined_call_operand.hbm [shape: s32[2,2,128], index: 1, kind: input, shape index: {}]   ;;  %s862_s2 = inlined_call_operand.hbm [shape: f32[2,1,1,128], index: 2, kind: output, shape index: {}]  }
   0x1   :  { %9 = vsyncpa [#allocation3 + $0x1], 0 }
   0x2   :  { %10 = vsyncpa [#allocation6], 0 }
   0x3   :  { %12 = vsyncpa [#allocation6 + $0x1], 0 }
   0x4   :  { %13 = vsyncpa [#allocation4], 0 }
   0x5   :  { %15 = vsyncpa [#allocation4 + $0x1], 0  ;;  %s644_s9 = smov 0   ;;  %s646_s10 = smov 0  }
   0x6   :  { %s648_s11 = smov 0   ;;  %s650_s12 = smov 0  }
   0x7   :  { %s652_s13 = smov 0   ;;  %s654_s14 = smov 0  }
   0x8 LB: > { %s381_s15 = sadd.s32 4294967295, %s621_s14   ;;  %s382_s16 = sadd.s32 4294967294, %s621_s14   ;;  %s621_s14 = sphi %s654_s14, %s21_s14   ;;  %s617_s13 = sphi %s652_s13, %s881_s13   ;;  %s613_s12 = sphi %s650_s12, %s880_s12   ;;  %s609_s11 = sphi %s648_s11, %s879_s11   ;;  %s605_s10 = sphi %s646_s10, %s878_s10   ;;  %s601_s9 = sphi %s644_s9, %s877_s9  }
   0x9   : > { %s33_s17 = sadd.s32 1, %s617_s13  ;;  %s42_s18 = sadd.s32 1, %s609_s11 }
   0xa   : > { %p35_p0 = scmp.ge.s32.totalorder %s33_s17, 2  ;;  %p49_p1 = scmp.ne.s32.totalorder %s609_s11, %s605_s10 }
   0xb   : > { %p50_p2 = scmp.eq.s32.totalorder %s621_s14, 0  ;;  %p55_p3 = scmp.ne.s32.totalorder %s605_s10, %s601_s9 }
   0xc   : > { %s883_s17 = smov (%p35_p0, %s33_s17), 0  ;;  %p56_p5 = scmp.eq.s32.totalorder %s381_s15, 0 }
   0xd   : > { %p685_p4 = por %p50_p2, %p49_p1  ;;  %s37_s20 = ssub.s32 %s617_s13, %s883_s17 }
   0xe   : > { %p109_p6 = scmp.eq.s32.totalorder %s381_s15, 1  ;;  %p40_p7 = scmp.eq.s32.totalorder %s37_s20, 0 }
   0xf   : > { %p691_p8 = por %p56_p5, %p55_p3  ;;  %p115_p10 = scmp.eq.s32.totalorder %s382_s16, 1 }
  0x10   : > { %p695_p9 = por %p109_p6, %p49_p1  ;;  %p416_p13 = scmp.lt.s32.totalorder %s621_s14, 2 }
  0x11   : > { %s866_s21 = scalar_select %p691_p8, 1, 0 }
  0x12   : > { %s867_s22 = scalar_select %p695_p9, 1, 0 }
  0x13   : > { %s700_s23 = scalar_select %p40_p7, %s609_s11, %s42_s18  }
  0x14   : > { %p702_p11 = por %p115_p10, %p55_p3  ;;  %s709_s25 = sand.u32 1, %s609_s11  }
  0x15   : > { %s385_s26 = sshll.u32 %s709_s25, 2  ;;  %s398_s27 = sshll.u32 %s617_s13, 6 }
  0x16   : > { %s868_s24 = scalar_select %p702_p11, 1, 0 }
  0x17   : > { %s716_s30 = scalar_lea.hbm %s860_s0, %s398_s27  ;;  %s139_s3 = scalar_lea.vmem [#allocation2], %s385_s26 }
  0x18   : > { %s147_s4 = sshll.u32 %s139_s3, 4  ;;  %p722_p0 = pnand %p416_p13, %p685_p4  ;;  %s718_s4 = int_to_ptr.vmem [resolvable:$true] %s147_s4 }
  0x19   : > { %s136_s6 = scalar_lea.sflag [#allocation3], %s709_s25  ;;  %s475_s7 = scalar_lea.hbm %s716_s30, 64 }
  0x1a   : > { %p476_p2 = scmp.ne.s32.totalorder %s716_s30, %s475_s7  ;;  %p477_p3 = pneg %p722_p0 }
  0x1b   : > { %s480_s16 = scalar_lea.hbm %s860_s0, 128  ;;  %p481_p4 = scmp.lt.u32.totalorder %s716_s30, %s860_s0 }
  0x1c   : > { %p478_p5 = pnand %p477_p3, %p476_p2  ;;  %p482_p7 = scmp.lt.u32.totalorder %s480_s16, %s475_s7 }
  0x1d   : > { %p484_p13 = scmp.lt.u32.totalorder %s475_s7, %s716_s30 }
  0x1e   : > { %p479_p6 = pneg %p478_p5  ;;  %p483_p10 = por %p482_p7, %p481_p4 }
  0x20   : > { %p485_p12 = por %p484_p13, %p483_p10 }
  0x22   : > { %p486_p1 = pnand %p485_p12, %p479_p6 }
  0x24   : > { %489 = shalt.err (!%p486_p1)
}
  0x25   : > { %s490_s20 = scalar_lea.vmem %s718_s4, 64  ;;  %s623_s26 = smov [#allocation2]  }
  0x26   : > { %p491_p2 = scmp.ne.s32.totalorder %s718_s4, %s490_s20  ;;  %s495_s27 = sshll.u32 %s623_s26, 4  ;;  %s496_s27 = int_to_ptr.vmem [resolvable:$false] %s495_s27 }
  0x27   : > { %s497_s28 = scalar_lea.vmem %s496_s27, 128  ;;  %p498_p9 = scmp.lt.s32.totalorder %s718_s4, %s496_s27 }
  0x28   : > { %p493_p5 = pnand %p491_p2, %p477_p3  ;;  %p499_p4 = scmp.lt.s32.totalorder %s497_s28, %s490_s20 }
  0x2a   : > { %p494_p11 = pneg %p493_p5  ;;  %p500_p7 = por %p499_p4, %p498_p9 }
  0x2c   : > { %p501_p10 = pnand %p500_p7, %p494_p11 }
  0x2e   : > { %504 = shalt.err (!%p501_p10)
}
  0x2f   : > { %s624_s29 = smov 32   ;;  %s625_s3 = smov 2  }
  0x30   : > { %408 = dma.hbm_to_vmem [thread:$0]  (!%p722_p0), %s716_s30, 64, %s718_s4, %s136_s6, %s624_s29, %s624_s29, %s625_s3  }
  0x31   : > { %p174_p12 = scmp.lt.s32.totalorder %s621_s14, 3  ;;  %s388_s7 = sshll.u32 %s709_s25, 1 }
  0x32   : > { %s389_s8 = sshll.u32 %s617_s13, 5  ;;  %p870_p9 = scmp.ge.s32.totalorder %s621_s14, 1 }
  0x33   : > { %s767_s19 = scalar_lea.hbm %s861_s1, %s389_s8  ;;  %s161_s20 = scalar_lea.vmem [#allocation5], %s388_s7 }
  0x34   : > { %p760_p11 = pnand %p870_p9, %p174_p12  ;;  %s169_s26 = sshll.u32 %s161_s20, 4  ;;  %s170_s26 = int_to_ptr.vmem [resolvable:$true] %s169_s26 }
  0x35   : > { %s158_s30 = scalar_lea.sflag [#allocation6], %s709_s25  ;;  %s505_s4 = scalar_lea.hbm %s767_s19, 32 }
  0x36   : > { %s871_s15 = scalar_select %p760_p11, 1, 0 }
  0x37   : > { %p506_p1 = scmp.ne.s32.totalorder %s767_s19, %s505_s4  ;;  %s510_s28 = scalar_lea.hbm %s861_s1, 64 }
  0x38   : > { %p511_p2 = scmp.lt.u32.totalorder %s767_s19, %s861_s1  ;;  %p512_p5 = scmp.lt.u32.totalorder %s510_s28, %s505_s4 }
  0x39   : > { %p508_p6 = pnand %p506_p1, %p477_p3  ;;  %p514_p7 = scmp.lt.u32.totalorder %s505_s4, %s767_s19 }
  0x3a   : > { %p513_p4 = por %p512_p5, %p511_p2 }
  0x3b   : > { %p509_p13 = pneg %p508_p6 }
  0x3c   : > { %p515_p10 = por %p514_p7, %p513_p4 }
  0x3e   : > { %p516_p12 = pnand %p515_p10, %p509_p13 }
  0x40   : > { %519 = shalt.err (!%p516_p12)
}
  0x41   : > { %s520_s25 = scalar_lea.vmem %s170_s26, 32  ;;  %s626_s7 = smov [#allocation5]  }
  0x42   : > { %p521_p9 = scmp.ne.s32.totalorder %s170_s26, %s520_s25  ;;  %s525_s8 = sshll.u32 %s626_s7, 4  ;;  %s526_s8 = int_to_ptr.vmem [resolvable:$false] %s525_s8 }
  0x43   : > { %s527_s16 = scalar_lea.vmem %s526_s8, 64  ;;  %p528_p8 = scmp.lt.s32.totalorder %s170_s26, %s526_s8 }
  0x44   : > { %p523_p1 = pnand %p521_p9, %p477_p3  ;;  %p529_p11 = scmp.lt.s32.totalorder %s527_s16, %s520_s25 }
  0x46   : > { %p524_p6 = pneg %p523_p1  ;;  %p530_p2 = por %p529_p11, %p528_p8 }
  0x48   : > { %p531_p5 = pnand %p530_p2, %p524_p6 }
  0x4a   : > { %534 = shalt.err (!%p531_p5)
}
  0x4b   : > { %411 = dma.hbm_to_vmem [thread:$0]  (!%p722_p0), %s767_s19, 32, %s170_s26, %s158_s30  }
  0x4c   : > { %p872_p13 = scmp.ne.s32.totalorder %s871_s15, 0 }
  0x4d   : > { %s792_s18 = sand.u32 (!%p872_p13), 1, %s605_s10   ;;  %p873_p3 = scmp.ne.s32.totalorder (!%p872_p13), %s866_s21, 0 }
  0x4e   : > { %178 = sbr.rel (%p872_p13) target bundleno = 163 (0xa3), region = 28  ;;  %s391_s20 = sshll.u32 (!%p872_p13), %s792_s18, 2 }
  0x4f   : > { %s181_s4 = scalar_lea.sflag (!%p872_p13), [#allocation3], %s792_s18  ;;  %s184_s6 = scalar_lea.vmem (!%p872_p13), [#allocation2], %s391_s20 }
  0x55   : > { %588 = dma.done.wait (%p873_p3), %s181_s4, 64  }
  0x56   : > { %590 = vsyncadd (%p873_p3), %s181_s4, 4294967232  ;;  %s392_s5 = sshll.u32 %s792_s18, 1  ;;  %s190_s15 = scalar_lea.sflag [#allocation6], %s792_s18 }
  0x57   : > { %s193_s19 = scalar_lea.vmem [#allocation5], %s392_s5 }
  0x58   : > { %592 = dma.done.wait (%p873_p3), %s190_s15, 32  }
  0x59   : > { %594 = vsyncadd (%p873_p3), %s190_s15, 4294967264  ;;  %v218_v0 = vld [vmem:[%s184_s6] sm:$0x3]  ;;  %v393_v1 = vld [vmem:[%s184_s6 + $0x2] sm:$0x3]  ;;  %v627_v13 = vmov 0.0  }
  0x5a   : > { %v227_v2 = vsub.f32 %v218_v0, %v393_v1  ;;  %v221_v6 = vld [vmem:[%s193_s19] sm:$0x3]  ;;  %v224_v8 = vadd.f32 %v393_v1, %v218_v0  ;;  %v226_v12 = vmax.f32 %v218_v0, %v393_v1  ;;  %vm257_vm5 = vcmask 1041408   ;;  %s217_s21 = scalar_lea.vmem [#allocation7], %s792_s18  ;;  %s395_s30 = sshll.u32 %s613_s12, 4 }
  0x5b   : > { %vm222_vm0 = vcmp.eq.s32.totalorder %v221_v6, 1  ;;  %vm253_vm2 = vcmp.ge.s32.totalorder %v221_v6, 0  ;;  %vm254_vm3 = vcmp.lt.s32.totalorder %v221_v6, 2  ;;  %s280_s26 = sshll.u32 %s217_s21, 4  ;;  %s813_s29 = scalar_lea.hbm %s862_s2, %s395_s30  ;;  %s808_s26 = int_to_ptr.vmem [resolvable:$true] %s280_s26 }
  0x5c   : > { %v228_v3 = vand.u32 2147483647, %v227_v2  ;;  %v223_v10 = vsel %vm222_vm0, %v393_v1, %v218_v0  ;;  %v394_v14 = vsel %vm222_vm0, 1.0, %v627_v13  ;;  %vm255_vm4 = vmand %vm253_vm2, %vm254_vm3  ;;  %s267_s3 = scalar_lea.sflag [#allocation4], %s792_s18  ;;  %s535_s25 = scalar_lea.vmem %s808_s26, 16 }
  0x5d   : > { %v225_v11 = vsub.f32 %v224_v8, %v223_v10  ;;  %v247_v15 = vmul.f32 0.0, %v394_v14  ;;  %v235_v16 = vsub.f32 %v223_v10, %v226_v12  ;;  %p536_p8 = scmp.ne.s32.totalorder %s808_s26, %s535_s25  ;;  %p874_p0 = scmp.ne.s32.totalorder %s867_s22, 0 }
  0x5e   : > { %v229_v4 = vsub.f32 0.0, %v228_v3  ;;  %s628_s12 = smov [#allocation7]  }
  0x5f   : > { %vm239_vm1 = vcmp.ge.f32.partialorder %v223_v10, %v225_v11  ;;  %v248_v22 = vadd.f32 0.5, %v247_v15  ;;  %p537_p11 = pnand %p536_p8, %p874_p0  ;;  %s539_s7 = sshll.u32 %s628_s12, 4  ;;  %s540_s7 = int_to_ptr.vmem [resolvable:$false] %s539_s7 }
  0x60   : > { %v230_v5 = vmul.f32 1.442695, %v229_v4  ;;  %s541_s8 = scalar_lea.vmem %s540_s7, 32  ;;  %p542_p7 = scmp.lt.s32.totalorder %s808_s26, %s540_s7 }
  0x61   : > { %v249_v27 = vsub.f32 0.0, %v248_v22  ;;  %p538_p4 = pneg %p537_p11  ;;  %p543_p10 = scmp.lt.s32.totalorder %s541_s8, %s535_s25 }
  0x62   : > { %469 = vpow2.f32 %v230_v5 }
  0x63   : > { %p544_p12 = por %p543_p10, %p542_p7 }
  0x65   : > { %p545_p9 = pnand %p544_p12, %p538_p4 }
  0x6c   : > { %v470_v7 = vpop.eup %469 }
  0x6d   : > { %v232_v9 = vadd.f32 1.0, %v470_v7  ;;  %v240_v17 = vsel %vm239_vm1, %v470_v7, 1.0 }
  0x6f   : > { %471 = vlog2.f32 %v232_v9 }
  0x70   : > { %473 = vrcp.f32 %v232_v9 }
  0x79   : > { %v472_v18 = vpop.eup %471 }
  0x7a   : > { %v474_v19 = vpop.eup %473  ;;  %v234_v20 = vmul.f32 0.6931472, %v472_v18 }
  0x7b   : > { %v242_v21 = vmul.f32 %v474_v19, %v240_v17 }
  0x7c   : > { %v236_v23 = vsub.f32 %v235_v16, %v234_v20 }
  0x7d   : > { %v243_v24 = vmax.f32 %v242_v21, 1e-06 }
  0x7e   : > { %v237_v25 = vmax.f32 %v236_v23, -13.815511 }
  0x7f   : > { %v244_v26 = vmin.f32 %v243_v24, 0.999999 }
  0x80   : > { %v238_v28 = vmin.f32 %v237_v25, -1.0000005e-06 }
  0x81   : > { %v250_v29 = vmul.f32 %v244_v26, %v244_v26 }
  0x83   : > { %v251_v30 = vmul.f32 %v250_v29, %v249_v27 }
  0x85   : > { %v252_v31 = vmul.f32 %v251_v30, %v238_v28 }
  0x87   : > { %v256_v32 = vsel %vm255_vm4, %v252_v31, 0.0 }
  0x88   : > { %v258_v33 = vsel %vm257_vm5, %v256_v32, 0.0 }
  0x89   : > { %v259_v34 = vrot.slane %v258_v33, 4 }
  0x8b   : > { %v260_v35 = vadd.f32 %v259_v34, %v258_v33 }
  0x8d   : > { %v261_v36 = vrot.slane %v260_v35, 2 }
  0x8f   : > { %v262_v37 = vadd.f32 %v261_v36, %v260_v35 }
  0x91   : > { %v263_v38 = vrot.slane %v262_v37, 1 }
  0x93   : > { %v264_v39 = vadd.f32 %v263_v38, %v262_v37 }
  0x95   : > { %265 = vst [vmem:[%s217_s21] sm:$0x1] %v264_v39 }
  0x96   : > { %548 = shalt.err (!%p545_p9)
}
  0x97   : > { %s549_s16 = scalar_lea.hbm %s813_s29, 16  ;;  %s553_s4 = scalar_lea.hbm %s862_s2, 32 }
  0x98   : > { %p550_p1 = scmp.ne.s32.totalorder %s813_s29, %s549_s16  ;;  %p554_p5 = scmp.lt.u32.totalorder %s813_s29, %s862_s2 }
  0x99   : > { %p555_p13 = scmp.lt.u32.totalorder %s553_s4, %s549_s16  ;;  %p557_p8 = scmp.lt.u32.totalorder %s549_s16, %s813_s29 }
  0x9a   : > { %p551_p6 = pnand %p550_p1, %p874_p0 }
  0x9b   : > { %p556_p3 = por %p555_p13, %p554_p5 }
  0x9c   : > { %p552_p2 = pneg %p551_p6 }
  0x9d   : > { %p558_p11 = por %p557_p8, %p556_p3 }
  0x9f   : > { %p559_p4 = pnand %p558_p11, %p552_p2 }
  0xa1   : > { %562 = shalt.err (!%p559_p4)
}
  0xa2   : > { %403 = dma.vmem_to_hbm [thread:$0]  (%p874_p0), %s808_s26, 16, %s813_s29, %s267_s3  }
  0xa3 PF: > { %s292_s15 = sand.u32 1, %s601_s9   ;;  %p875_p7 = scmp.ne.s32.totalorder %s868_s24, 0 }
  0xa4   : > { %p876_p10 = scmp.ge.s32.totalorder %s621_s14, 2  ;;  %s293_s19 = scalar_lea.sflag [#allocation4], %s292_s15 }
  0xa6   : > { %p413_p12 = pnand %p876_p10, %p875_p7 }
  0xa8   : > { %596 = dma.done.wait (!%p413_p12), %s293_s19, 16  }
  0xa9   : > { %598 = vsyncadd (!%p413_p12), %s293_s19, 4294967280  ;;  %s21_s14 = sadd.s32 1, %s621_s14   ;;  %s877_s9 = smov %s605_s10 }
  0xaa   : > { %p18_p9 = scmp.ge.s32.totalorder %s21_s14, 4   ;;  %s878_s10 = smov %s609_s11 }
  0xab   : > { %s879_s11 = smov %s700_s23  ;;  %s880_s12 = smov %s617_s13 }
  0xac   : > { %s881_s13 = smov %s883_s17  ;;  %20 = sbr.rel (!%p18_p9) target bundleno = 8 (0x8), region = 87 }
  0xb3   :  { %297 = vsyncpa [#allocation3], 1 }
  0xb4   :  { %299 = vsyncpa [#allocation3 + $0x1], 1 }
  0xb5   :  { %300 = vsyncpa [#allocation6], 1 }
  0xb6   :  { %302 = vsyncpa [#allocation6 + $0x1], 1 }
  0xb7   :  { %303 = vsyncpa [#allocation4], 1 }
  0xb8   :  { %305 = vsyncpa [#allocation4 + $0x1], 1 }

</bundles_post_ra>
